<compile_context>
chip_gen: v6e
topology: v6e:2x2x1
jax: 0.10.0
libtpu: 0.0.40
codegen_flags: <defaults>
</compile_context>

<pallas_src>
import jax
import jax.numpy as jnp
import numpy as np
from jax import lax
from jax.experimental import pallas as pl
from jax.experimental.pallas import tpu as pltpu


# ----------------------------------------------------------------------------
# Fused Pallas kernel: all conv layers + readout in one launch
# ----------------------------------------------------------------------------
def _make_gnn_kernel(num_layers, num_batch, hidden_dim):
    """Ref order (inputs): adj (bf16, N x N), x (N, B*Fin), then per layer
    (w_blk, b_rep), then lin1_w, lin1_b, lin2_w, lin2_b.  Output ref last."""

    def kernel(*refs):
        adj_ref, x_ref = refs[:2]
        conv_refs = refs[2:2 + 2 * num_layers]
        lw1_ref, lb1_ref, lw2_ref, lb2_ref = refs[2 + 2 * num_layers:-1]
        o_ref = refs[-1]

        adj = adj_ref[...]            # (N, N) bf16 normalized adjacency (only copy)
        h = x_ref[...]                # (N, B*Fin) f32, batch folded into lanes

        # ---- DirGCN layers (alpha folded into the stacked weight / bias) ----
        for i in range(num_layers):
            w_blk = conv_refs[2 * i][...]       # (2*B*Fin_i, B*Fout_i)
            b_rep = conv_refs[2 * i + 1][...]   # (1, B*Fout_i)
            hb = h.astype(jnp.bfloat16)
            # forward aggregation: adj @ h
            t_src = jnp.dot(adj, hb, preferred_element_type=jnp.float32)
            # reverse aggregation: adj^T @ h, via swapped contracting dims
            # (adj_t_norm == adj_norm^T, so no second adjacency is needed)
            t_dst = lax.dot_general(adj, hb, (((0,), (0,)), ((), ())),
                                    preferred_element_type=jnp.float32)
            t_cat = jnp.concatenate([t_src, t_dst], axis=1)   # (N, 2*B*Fin)
            # single fused transform matmul per layer
            h = jnp.dot(t_cat, w_blk, preferred_element_type=jnp.float32) + b_rep
            if i != num_layers - 1:
                h = jnp.maximum(h, 0.0)          # ReLU (dropout p=0 -> identity)

        # ---- readout: max over nodes -> (B, H) -> MLP -> log_softmax ----
        H = hidden_dim
        pooled_flat = jnp.max(h, axis=0, keepdims=True)        # (1, B*H), one reduction
        pooled = jnp.concatenate(
            [pooled_flat[:, b * H:(b + 1) * H] for b in range(num_batch)],
            axis=0)                                             # (B, H)
        z = jnp.dot(pooled, lw1_ref[...],
                    preferred_element_type=jnp.float32) + lb1_ref[...]
        z = jnp.where(z > 0, z, 0.01 * z)                       # LeakyReLU(0.01)
        logits = jnp.dot(z, lw2_ref[...],
                         preferred_element_type=jnp.float32) + lb2_ref[...]
        m = jnp.max(logits, axis=1, keepdims=True)
        shifted = logits - m
        lse = jnp.log(jnp.sum(jnp.exp(shifted), axis=1, keepdims=True))
        o_ref[...] = shifted - lse                              # single dense store

    return kernel


# ----------------------------------------------------------------------------
# Glue: directed adjacency normalization (one-time preprocessing) + init
# ----------------------------------------------------------------------------
def directed_norm_dense(adj):
    # D_out^{-1/2} A D_in^{-1/2}, with 0-degree rows/cols mapped to 0.
    in_deg = adj.sum(axis=0)
    out_deg = adj.sum(axis=1)
    in_inv_sqrt = jnp.where(in_deg > 0, in_deg ** -0.5, 0.0)
    out_inv_sqrt = jnp.where(out_deg > 0, out_deg ** -0.5, 0.0)
    return adj * out_inv_sqrt[:, None] * in_inv_sqrt[None, :]


def linear_init(key, fan_in, fan_out):
    # Matches torch.nn.Linear default: U(-1/sqrt(fan_in), 1/sqrt(fan_in)).
    k = 1.0 / np.sqrt(fan_in)
    wkey, bkey = jax.random.split(key)
    w = jax.random.uniform(wkey, (fan_in, fan_out), jnp.float32, -k, k)
    b = jax.random.uniform(bkey, (1, fan_out), jnp.float32, -k, k)
    return w, b


# ----------------------------------------------------------------------------
# Full GNN forward (single fused pallas_call)
# ----------------------------------------------------------------------------
def gnn_forward(x, edge_index, params, alpha):
    B, N, Fin = x.shape
    num_layers = len(params["convs"])
    num_classes = params["lin2_w"].shape[1]

    # dense adjacency + directed normalization (one-time preprocessing);
    # adj_t_norm == adj_norm^T, so only one (N, N) matrix is built / shipped.
    row, col = edge_index
    adj = jnp.zeros((N, N), jnp.float32).at[row, col].set(1.0)
    adj_b16 = directed_norm_dense(adj).astype(jnp.bfloat16)

    # fold batch into the minor (lane) dim: h layout (N, B*Fin)
    x_nbf = jnp.transpose(x, (1, 0, 2)).reshape(N, B * Fin)

    # fold alpha into per-layer stacked, per-batch block-diagonal transform
    # weights, and a replicated blended bias
    a = alpha[0]
    eye_b = jnp.eye(B, dtype=jnp.float32)
    conv_args = []
    for cp in params["convs"]:
        w_blk = jnp.concatenate(
            [jnp.kron(eye_b, a * cp["w_s2d"]),
             jnp.kron(eye_b, (1.0 - a) * cp["w_d2s"])], axis=0)
        b_rep = jnp.tile(a * cp["b_s2d"] + (1.0 - a) * cp["b_d2s"], (1, B))
        conv_args += [w_blk, b_rep]

    kernel = _make_gnn_kernel(num_layers, B, params["lin1_w"].shape[0])
    vmem_spec = pl.BlockSpec(memory_space=pltpu.MemorySpace.VMEM)
    n_in = 2 + 2 * num_layers + 4
    return pl.pallas_call(
        kernel,
        out_shape=jax.ShapeDtypeStruct((B, num_classes), jnp.float32),
        in_specs=[vmem_spec] * n_in,
        out_specs=vmem_spec,
        compiler_params=pltpu.CompilerParams(
            vmem_limit_bytes=32 * 1024 * 1024),
    )(adj_b16, x_nbf, *conv_args,
      params["lin1_w"], params["lin1_b"], params["lin2_w"], params["lin2_b"])


gnn_forward_jit = jax.jit(gnn_forward)


# Pure-JAX f32 reference (silent correctness check; mirrors the PyTorch module)
def gnn_forward_ref(x, edge_index, params, alpha):
    N = x.shape[1]
    row, col = edge_index
    adj = jnp.zeros((N, N), jnp.float32).at[row, col].set(1.0)
    adj_t = jnp.zeros((N, N), jnp.float32).at[col, row].set(1.0)
    adj_norm = directed_norm_dense(adj)
    adj_t_norm = directed_norm_dense(adj_t)
    a = alpha[0]
    n_layers = len(params["convs"])
    h = x
    for i, cp in enumerate(params["convs"]):
        h1 = jnp.einsum("nm,bmf->bnf", adj_norm, h) @ cp["w_s2d"] + cp["b_s2d"]
        h2 = jnp.einsum("nm,bmf->bnf", adj_t_norm, h) @ cp["w_d2s"] + cp["b_d2s"]
        h = a * h1 + (1.0 - a) * h2
        if i != n_layers - 1:
            h = jnp.maximum(h, 0.0)
    pooled = jnp.max(h, axis=1)
    z = pooled @ params["lin1_w"] + params["lin1_b"]
    z = jnp.where(z > 0, z, 0.01 * z)
    logits = z @ params["lin2_w"] + params["lin2_b"]
    return jax.nn.log_softmax(logits, axis=1)


# ----------------------------------------------------------------------------
if __name__ == "__main__":
    B, N = 2, 16
    num_features, hidden_dim, num_classes = 4, 32, 8
    num_layers = 2
    alpha_val = 0.5

    key = jax.random.PRNGKey(0)
    keys = jax.random.split(key, 8)

    # node features (B, N, F)
    x = jax.random.normal(keys[0], (B, N, num_features), jnp.float32)

    # deterministic directed edge set: ring + skip edges
    src = np.concatenate([np.arange(N), np.arange(0, N, 2)])
    dst = np.concatenate([(np.arange(N) + 1) % N, (np.arange(0, N, 2) + 3) % N])
    edge_index = jnp.asarray(np.stack([src, dst]), jnp.int32)

    # parameters (deterministic init, torch.nn.Linear-style)
    conv_params = []
    dims = [num_features] + [hidden_dim] * num_layers
    for i in range(num_layers):
        k1, k2 = jax.random.split(keys[1 + i])
        w_s2d, b_s2d = linear_init(k1, dims[i], dims[i + 1])
        w_d2s, b_d2s = linear_init(k2, dims[i], dims[i + 1])
        conv_params.append(dict(w_s2d=w_s2d, b_s2d=b_s2d, w_d2s=w_d2s, b_d2s=b_d2s))
    lin1_w, lin1_b = linear_init(keys[5], hidden_dim, hidden_dim)
    lin2_w, lin2_b = linear_init(keys[6], hidden_dim, num_classes)
    params = dict(convs=conv_params,
                  lin1_w=lin1_w, lin1_b=lin1_b, lin2_w=lin2_w, lin2_b=lin2_b)
    alpha = jnp.array([alpha_val], jnp.float32)   # nn.Parameter(ones(1)*alpha)

    out = gnn_forward_jit(x, edge_index, params, alpha)
    out = jax.block_until_ready(out)

    # relaxed tolerance: aggregation operands are bf16 in the kernel
    ref = gnn_forward_ref(x, edge_index, params, alpha)
    np.testing.assert_allclose(np.asarray(out), np.asarray(ref), rtol=5e-2, atol=5e-2)

    print("KERNEL_OK")
</pallas_src>

<mosaic_0001>
module attributes {stable_mosaic.version = 11 : i64} {
  func.func @kernel(%arg0: memref<16x16xbf16, #tpu.memory_space<vmem>>, %arg1: memref<16x8xf32, #tpu.memory_space<vmem>>, %arg2: memref<16x64xf32, #tpu.memory_space<vmem>>, %arg3: memref<1x64xf32, #tpu.memory_space<vmem>>, %arg4: memref<128x64xf32, #tpu.memory_space<vmem>>, %arg5: memref<1x64xf32, #tpu.memory_space<vmem>>, %arg6: memref<32x32xf32, #tpu.memory_space<vmem>>, %arg7: memref<1x32xf32, #tpu.memory_space<vmem>>, %arg8: memref<32x8xf32, #tpu.memory_space<vmem>>, %arg9: memref<1x8xf32, #tpu.memory_space<vmem>>, %arg10: memref<2x8xf32, #tpu.memory_space<vmem>>) attributes {dimension_semantics = [], scalar_prefetch = 0 : i64, scratch_operands = 0 : i64, tpu.core_type = #tpu.core_type<tc>} {
    %c0 = arith.constant 0 : index
    %c0_0 = arith.constant 0 : index
    %0 = vector.load %arg0[%c0, %c0_0] : memref<16x16xbf16, #tpu.memory_space<vmem>>, vector<16x16xbf16>
    %c0_1 = arith.constant 0 : index
    %c0_2 = arith.constant 0 : index
    %1 = vector.load %arg1[%c0_1, %c0_2] : memref<16x8xf32, #tpu.memory_space<vmem>>, vector<16x8xf32>
    %c0_3 = arith.constant 0 : index
    %c0_4 = arith.constant 0 : index
    %2 = vector.load %arg2[%c0_3, %c0_4] : memref<16x64xf32, #tpu.memory_space<vmem>>, vector<16x64xf32>
    %c0_5 = arith.constant 0 : index
    %c0_6 = arith.constant 0 : index
    %3 = vector.load %arg3[%c0_5, %c0_6] : memref<1x64xf32, #tpu.memory_space<vmem>>, vector<1x64xf32>
    %4 = arith.truncf %1 : vector<16x8xf32> to vector<16x8xbf16>
    %cst = arith.constant dense<0.000000e+00> : vector<16x8xf32>
    %5 = tpu.matmul %0, %4, %cst {dimension_numbers = #tpu.dot_dimension_numbers<[1], [0], [0], [1], [0, 0, 1, 1], [], []>} : vector<16x16xbf16>, vector<16x8xbf16>, vector<16x8xf32> -> vector<16x8xf32>
    %cst_7 = arith.constant dense<0.000000e+00> : vector<16x8xf32>
    %6 = tpu.matmul %0, %4, %cst_7 {dimension_numbers = #tpu.dot_dimension_numbers<[0], [0], [1], [1], [0, 1, 1, 1], [], []>} : vector<16x16xbf16>, vector<16x8xbf16>, vector<16x8xf32> -> vector<16x8xf32>
    %7 = tpu.concatenate %5, %6 in 1 : vector<16x8xf32>, vector<16x8xf32> -> vector<16x16xf32>
    %cst_8 = arith.constant dense<0.000000e+00> : vector<16x64xf32>
    %8 = tpu.matmul %7, %2, %cst_8 {dimension_numbers = #tpu.dot_dimension_numbers<[1], [0], [0], [1], [0, 0, 1, 1], [], []>} : vector<16x16xf32>, vector<16x64xf32>, vector<16x64xf32> -> vector<16x64xf32>
    %9 = vector.broadcast %3 : vector<1x64xf32> to vector<16x64xf32>
    %10 = arith.addf %8, %9 : vector<16x64xf32>
    %cst_9 = arith.constant 0.000000e+00 : f32
    %11 = vector.broadcast %cst_9 : f32 to vector<16x64xf32>
    %12 = arith.maximumf %10, %11 : vector<16x64xf32>
    %c0_10 = arith.constant 0 : index
    %c0_11 = arith.constant 0 : index
    %13 = vector.load %arg4[%c0_10, %c0_11] : memref<128x64xf32, #tpu.memory_space<vmem>>, vector<128x64xf32>
    %c0_12 = arith.constant 0 : index
    %c0_13 = arith.constant 0 : index
    %14 = vector.load %arg5[%c0_12, %c0_13] : memref<1x64xf32, #tpu.memory_space<vmem>>, vector<1x64xf32>
    %15 = arith.truncf %12 : vector<16x64xf32> to vector<16x64xbf16>
    %cst_14 = arith.constant dense<0.000000e+00> : vector<16x64xf32>
    %16 = tpu.matmul %0, %15, %cst_14 {dimension_numbers = #tpu.dot_dimension_numbers<[1], [0], [0], [1], [0, 0, 1, 1], [], []>} : vector<16x16xbf16>, vector<16x64xbf16>, vector<16x64xf32> -> vector<16x64xf32>
    %cst_15 = arith.constant dense<0.000000e+00> : vector<16x64xf32>
    %17 = tpu.matmul %0, %15, %cst_15 {dimension_numbers = #tpu.dot_dimension_numbers<[0], [0], [1], [1], [0, 1, 1, 1], [], []>} : vector<16x16xbf16>, vector<16x64xbf16>, vector<16x64xf32> -> vector<16x64xf32>
    %18 = tpu.concatenate %16, %17 in 1 : vector<16x64xf32>, vector<16x64xf32> -> vector<16x128xf32>
    %cst_16 = arith.constant dense<0.000000e+00> : vector<16x64xf32>
    %19 = tpu.matmul %18, %13, %cst_16 {dimension_numbers = #tpu.dot_dimension_numbers<[1], [0], [0], [1], [0, 0, 1, 1], [], []>} : vector<16x128xf32>, vector<128x64xf32>, vector<16x64xf32> -> vector<16x64xf32>
    %20 = vector.broadcast %14 : vector<1x64xf32> to vector<16x64xf32>
    %21 = arith.addf %19, %20 : vector<16x64xf32>
    %cst_17 = arith.constant dense<0xFF800000> : vector<64xf32>
    %22 = vector.multi_reduction <maximumf>, %21, %cst_17 [0] : vector<16x64xf32> to vector<64xf32>
    %23 = vector.shape_cast %22 : vector<64xf32> to vector<1x64xf32>
    %24 = vector.extract_strided_slice %23 {offsets = [0, 0], sizes = [1, 32], strides = [1, 1]} : vector<1x64xf32> to vector<1x32xf32>
    %25 = vector.extract_strided_slice %23 {offsets = [0, 32], sizes = [1, 32], strides = [1, 1]} : vector<1x64xf32> to vector<1x32xf32>
    %26 = tpu.concatenate %24, %25 in 0 : vector<1x32xf32>, vector<1x32xf32> -> vector<2x32xf32>
    %c0_18 = arith.constant 0 : index
    %c0_19 = arith.constant 0 : index
    %27 = vector.load %arg6[%c0_18, %c0_19] : memref<32x32xf32, #tpu.memory_space<vmem>>, vector<32x32xf32>
    %cst_20 = arith.constant dense<0.000000e+00> : vector<2x32xf32>
    %28 = tpu.matmul %26, %27, %cst_20 {dimension_numbers = #tpu.dot_dimension_numbers<[1], [0], [0], [1], [0, 0, 1, 1], [], []>} : vector<2x32xf32>, vector<32x32xf32>, vector<2x32xf32> -> vector<2x32xf32>
    %c0_21 = arith.constant 0 : index
    %c0_22 = arith.constant 0 : index
    %29 = vector.load %arg7[%c0_21, %c0_22] : memref<1x32xf32, #tpu.memory_space<vmem>>, vector<1x32xf32>
    %30 = vector.broadcast %29 : vector<1x32xf32> to vector<2x32xf32>
    %31 = arith.addf %28, %30 : vector<2x32xf32>
    %cst_23 = arith.constant 0.000000e+00 : f32
    %32 = vector.broadcast %cst_23 : f32 to vector<2x32xf32>
    %33 = arith.cmpf ogt, %31, %32 : vector<2x32xf32>
    %cst_24 = arith.constant 0.00999999977 : f32
    %34 = vector.broadcast %cst_24 : f32 to vector<2x32xf32>
    %35 = arith.mulf %34, %31 : vector<2x32xf32>
    %36 = arith.select %33, %31, %35 : vector<2x32xi1>, vector<2x32xf32>
    %c0_25 = arith.constant 0 : index
    %c0_26 = arith.constant 0 : index
    %37 = vector.load %arg8[%c0_25, %c0_26] : memref<32x8xf32, #tpu.memory_space<vmem>>, vector<32x8xf32>
    %cst_27 = arith.constant dense<0.000000e+00> : vector<2x8xf32>
    %38 = tpu.matmul %36, %37, %cst_27 {dimension_numbers = #tpu.dot_dimension_numbers<[1], [0], [0], [1], [0, 0, 1, 1], [], []>} : vector<2x32xf32>, vector<32x8xf32>, vector<2x8xf32> -> vector<2x8xf32>
    %c0_28 = arith.constant 0 : index
    %c0_29 = arith.constant 0 : index
    %39 = vector.load %arg9[%c0_28, %c0_29] : memref<1x8xf32, #tpu.memory_space<vmem>>, vector<1x8xf32>
    %40 = vector.broadcast %39 : vector<1x8xf32> to vector<2x8xf32>
    %41 = arith.addf %38, %40 : vector<2x8xf32>
    %cst_30 = arith.constant dense<0xFF800000> : vector<2xf32>
    %42 = vector.multi_reduction <maximumf>, %41, %cst_30 [1] : vector<2x8xf32> to vector<2xf32>
    %43 = vector.shape_cast %42 : vector<2xf32> to vector<2x1xf32>
    %44 = vector.broadcast %43 : vector<2x1xf32> to vector<2x8xf32>
    %45 = arith.subf %41, %44 : vector<2x8xf32>
    %46 = math.exp %45 : vector<2x8xf32>
    %cst_31 = arith.constant dense<0.000000e+00> : vector<2xf32>
    %47 = vector.multi_reduction <add>, %46, %cst_31 [1] : vector<2x8xf32> to vector<2xf32>
    %48 = vector.shape_cast %47 : vector<2xf32> to vector<2x1xf32>
    %49 = math.log %48 : vector<2x1xf32>
    %50 = vector.broadcast %49 : vector<2x1xf32> to vector<2x8xf32>
    %51 = arith.subf %45, %50 : vector<2x8xf32>
    %c0_32 = arith.constant 0 : index
    %c0_33 = arith.constant 0 : index
    %52 = vector.load %arg10[%c0_32, %c0_33] : memref<2x8xf32, #tpu.memory_space<vmem>>, vector<2x8xf32>
    tpu.vector_store %arg10[%c0_32, %c0_33], %51 {strides = array<i32>} : memref<2x8xf32, #tpu.memory_space<vmem>>, vector<2x8xf32>,
    return
  }
}

</mosaic_0001>

<bundles_post_ra>
// kernel: gnn_forward.1
= control target key start
LH: loop header
LB: loop body
LE: loop exit
PB: predicated region body
PF: predicated region fallthrough
CT: control target
= control target key end

     0   :  { %v843_v1 = vmov 0.0   ;;  %vm844_vm0 = vmmov 0   ;;  %s1045_s0 = inlined_call_operand.vmem [shape: bf16[16,16], index: 0, kind: input, shape index: {}]   ;;  %s1046_s1 = inlined_call_operand.vmem [shape: f32[16,8], index: 1, kind: input, shape index: {}]   ;;  %s1047_s2 = inlined_call_operand.vmem [shape: f32[16,64], index: 2, kind: input, shape index: {}]   ;;  %s1048_s3 = inlined_call_operand.vmem [shape: f32[1,64], index: 3, kind: input, shape index: {}]   ;;  %s1049_s4 = inlined_call_operand.vmem [shape: f32[128,64], index: 4, kind: input, shape index: {}]   ;;  %s1050_s5 = inlined_call_operand.vmem [shape: f32[1,64], index: 5, kind: input, shape index: {}]   ;;  %s1051_s6 = inlined_call_operand.vmem [shape: f32[32,32], index: 6, kind: input, shape index: {}]   ;;  %s1052_s7 = inlined_call_operand.vmem [shape: f32[1,32], index: 7, kind: input, shape index: {}]   ;;  %s1053_s8 = inlined_call_operand.vmem [shape: f32[32,8], index: 8, kind: input, shape index: {}]   ;;  %s1054_s9 = inlined_call_operand.vmem [shape: f32[1,8], index: 9, kind: input, shape index: {}]   ;;  %s1055_s10 = inlined_call_operand.hbm [shape: f32[2,8], index: 10, kind: output, shape index: {}]  }
   0x1   :  { %v816_v0 = vld [vmem:[%s1045_s0] sm:$0xff]   ;;  %716 = vmatprep.subr.bf16.mxu0 %v843_v1  ;;  %v40_v3 = vld [vmem:[%s1046_s1 + $0x8] sm:$0xff]  ;;  %735 = vmatprep.subr.bf16.mxu1 %v843_v1 }
   0x2   :  { %v39_v2 = vld [vmem:[%s1046_s1] sm:$0xff]  ;;  %96 = vxpose.xlu0.c.b16.start.end [1/1] (short) (narrow) %v816_v0, 16  ;;  %718 = vmatprep.mubr.msk.bf16.mxu0 %vm844_vm0, %v843_v1 }
   0x3   :  { %v44_v4 = vpack.c.bf16 %v40_v3, %v39_v2 }
   0x4   :  { %15 = vsyncpa [#allocation3], 0  ;;  %737 = vmatprep.mubr.msk.bf16.mxu1 %vm844_vm0, %v843_v1  ;;  %vm50_vm1 = vcmask 130048   ;;  %v42_v6 = vld [vmem:[%s1047_s2 + $0x8] sm:$0xff]  ;;  %v41_v11 = vld [vmem:[%s1047_s2] sm:$0xff]  ;;  %s845_s21 = smov 8  }
   0x5   :  { %717 = vmatpush3.bf16.msra.mxu0 %v44_v4  ;;  %vm164_vm2 = vcmask 64512   ;;  %v666_v20 = vld [vmem:[%s1048_s3] ss:$0 sm:$0xff]  ;;  %v271_v28 = vld [vmem:[%s1049_s4 + $0x78] sm:$0xff]  ;;  %v270_v29 = vld [vmem:[%s1049_s4 + $0x70] sm:$0xff]  ;;  %s846_s30 = smov 64  }
   0x6   :  { %722 = vmatprep.subr.bf16.mxu0 %v843_v1  ;;  %v269_v30 = vld [vmem:[%s1049_s4 + $0x68] sm:$0xff]  ;;  %v268_v31 = vld [vmem:[%s1049_s4 + $0x60] sm:$0xff]  ;;  %v267_v32 = vld [vmem:[%s1049_s4 + $0x58] sm:$0xff]  ;;  %vm364_vm3 = vcmask 523264   ;;  %vm461_vm4 = vcmask 1040384   ;;  %vm474_vm5 = vcmask 261120  }
   0x7   :  { %v266_v33 = vld [vmem:[%s1049_s4 + $0x50] sm:$0xff]  ;;  %v265_v34 = vld [vmem:[%s1049_s4 + $0x48] sm:$0xff]  ;;  %v264_v35 = vld [vmem:[%s1049_s4 + $0x40] sm:$0xff]  ;;  %vm635_vm7 = vcmask 58368  }
   0x8   :  { %719 = vmatmul.mubr.msk.bf16.vlgmr.msra.gmra.mxu0 %vm50_vm1, %v816_v0  ;;  %v263_v36 = vld [vmem:[%s1049_s4 + $0x38] sm:$0xff]  ;;  %v262_v37 = vld [vmem:[%s1049_s4 + $0x30] sm:$0xff]  ;;  %v261_v38 = vld [vmem:[%s1049_s4 + $0x28] sm:$0xff] }
   0x9   :  { %723 = vmatpush3.bf16.msra.mxu0 %v44_v4  ;;  %724 = vmatprep.mubr.msk.bf16.mxu0 %vm844_vm0, %v843_v1  ;;  %v260_v39 = vld [vmem:[%s1049_s4 + $0x20] sm:$0xff]  ;;  %v259_v40 = vld [vmem:[%s1049_s4 + $0x18] sm:$0xff]  ;;  %v258_v41 = vld [vmem:[%s1049_s4 + $0x10] sm:$0xff] }
   0xa   :  { %728 = vmatprep.subr.mxu0 %v42_v6  ;;  %v257_v42 = vld [vmem:[%s1049_s4 + $0x8] sm:$0xff]  ;;  %v256_v43 = vld [vmem:[%s1049_s4] sm:$0xff]  ;;  %v466_v58 = vld [vmem:[%s1051_s6 + $0x18] sm:$0xff] }
   0xb   :  { %v465_v59 = vld [vmem:[%s1051_s6 + $0x10] sm:$0xff]  ;;  %v464_v60 = vld [vmem:[%s1051_s6 + $0x8] sm:$0xff]  ;;  %v671_v61 = vld [vmem:[%s1050_s5] ss:$0 sm:$0xff]  ;;  %s847_s5 = smov 96  }
  0x64   :  { %v104_v5 = vpop.trf.xlu0 }
  0x65   :  { %725 = vmatmul.mubr.msk.bf16.vlgmr.msra.gmra.mxu0 %vm50_vm1, %v104_v5 }
  0x66   :  { %729 = vmatpush3.msra.mxu0 %v42_v6  ;;  %v463_v6 = vld [vmem:[%s1051_s6] sm:$0xff] }
  0x67   :  { %730 = vmatprep.subr.mxu0 %v41_v11 }
  0x68   :  { %731 = vmatpush3.msra.mxu0 %v41_v11 }
  0x69   :  { %741 = vmatprep.subr.bf16.mxu0 %v843_v1 }
  0xc8   :  { %v88_v7 = vpop.f32.mrf.mxu0 }
  0xca   :  { %v720_v8 = vpop.f32.mrf.mxu0 }
  0xcc   :  { %v91_v9 = vpop.f32.mrf.mxu0 }
  0xce   :  { %v721_v10 = vpop.f32.mrf.mxu0 }
 0x125   :  { %v149_v12 = vpop.f32.mrf.mxu0 }
 0x126   :  { %158 = vrot.lane.b32.xlu0 %v149_v12, %s845_s21 }
 0x127   :  { %v726_v13 = vpop.f32.mrf.mxu0 }
 0x129   :  { %v152_v14 = vpop.f32.mrf.mxu0 }
 0x12a   :  { %160 = vrot.lane.b32.xlu1 %v152_v14, %s845_s21  ;;  %v554_v14 = vld [vmem:[%s1053_s8 + $0x18] sm:$0xff] }
 0x12b   :  { %v727_v15 = vpop.f32.mrf.mxu0 }
 0x198   :  { %v159_v16 = vpop.permute.xlu0 %158 }
 0x199   :  { %v165_v17 = vsel %vm164_vm2, %v88_v7, %v159_v16  ;;  %v553_v16 = vld [vmem:[%s1053_s8 + $0x10] sm:$0xff] }
 0x19a   :  { %732 = vmatprep.mubr.msk.f32.mxu0 %vm50_vm1, %v165_v17  ;;  %v552_v17 = vld [vmem:[%s1053_s8 + $0x8] sm:$0xff] }
 0x19c   :  { %v161_v18 = vpop.permute.xlu1 %160 }
 0x19d   :  { %v166_v19 = vsel %vm164_vm2, %v91_v9, %v161_v18  ;;  %v551_v18 = vld [vmem:[%s1053_s8] sm:$0xff] }
 0x19e   :  { %733 = vmatmul.mubr.msk.f32.vlgmr.msra.gmra.mxu0 %vm50_vm1, %v166_v19  ;;  %v672_v19 = vld [vmem:[%s1052_s7] ss:$0 sm:$0xff]  ;;  %s848_s7 = smov [#allocation2]  }
 0x19f   :  { %743 = vmatprep.mubr.msk.bf16.mxu0 %vm844_vm0, %v843_v1  ;;  %s655_s8 = sshll.u32 %s848_s7, 4  ;;  %s656_s8 = int_to_ptr.vmem [resolvable:$true] %s655_s8 }
 0x1a0   :  { %p826_p1 = scmp.lt.s32.totalorder %s656_s8, %s656_s8 }
 0x25e   :  { %v734_v21 = vpop.f32.mrf.mxu0 }
 0x25f   :  { %v251_v22 = vadd.f32 %v734_v21, %v666_v20 }
 0x260   :  { %v245_v23 = vpop.f32.mrf.mxu0 }
 0x261   :  { %v246_v24 = vadd.f32 %v666_v20, %v245_v23  ;;  %v255_v25 = vmax.f32 %v251_v22, 0.0 }
 0x263   :  { %v254_v26 = vmax.f32 %v246_v24, 0.0 }
 0x265   :  { %v273_v27 = vpack.c.bf16 %v255_v25, %v254_v26 }
 0x267   :  { %736 = vmatpush3.bf16.msra.mxu1 %v273_v27  ;;  %742 = vmatpush3.bf16.msra.mxu0 %v273_v27 }
 0x268   :  { %782 = vmatprep.subr.mxu0 %v843_v1  ;;  %747 = vmatprep.subr.mxu1 %v271_v28 }
 0x26a   :  { %744 = vmatmul.mubr.msk.bf16.vlgmr.msra.gmra.mxu0 %vm50_vm1, %v104_v5  ;;  %738 = vmatmul.mubr.msk.bf16.vlgmr.msra.gmra.mxu1 %vm50_vm1, %v816_v0 }
 0x26b   :  { %790 = vmatprep.mubr.msk.f32.mxu0 %vm844_vm0, %v843_v1  ;;  %748 = vmatpush3.msra.mxu1 %v271_v28 }
 0x26c   :  { %749 = vmatprep.subr.mxu1 %v270_v29  ;;  %783 = vmatpush3.msra.mxu0 %v466_v58 }
 0x26d   :  { %750 = vmatpush3.msra.mxu1 %v270_v29  ;;  %784 = vmatprep.subr.mxu0 %v843_v1 }
 0x26e   :  { %751 = vmatprep.subr.mxu1 %v269_v30  ;;  %785 = vmatpush3.msra.mxu0 %v465_v59 }
 0x26f   :  { %752 = vmatpush3.msra.mxu1 %v269_v30  ;;  %786 = vmatprep.subr.mxu0 %v843_v1 }
 0x270   :  { %753 = vmatprep.subr.mxu1 %v268_v31  ;;  %787 = vmatpush3.msra.mxu0 %v464_v60 }
 0x271   :  { %754 = vmatpush3.msra.mxu1 %v268_v31  ;;  %788 = vmatprep.subr.mxu0 %v843_v1 }
 0x272   :  { %755 = vmatprep.subr.mxu1 %v267_v32  ;;  %789 = vmatpush3.msra.mxu0 %v463_v6 }
 0x273   :  { %756 = vmatpush3.msra.mxu1 %v267_v32  ;;  %793 = vmatprep.subr.mxu0 %v843_v1 }
 0x274   :  { %757 = vmatprep.subr.mxu1 %v266_v33 }
 0x275   :  { %758 = vmatpush3.msra.mxu1 %v266_v33 }
 0x276   :  { %759 = vmatprep.subr.mxu1 %v265_v34 }
 0x277   :  { %760 = vmatpush3.msra.mxu1 %v265_v34 }
 0x278   :  { %761 = vmatprep.subr.mxu1 %v264_v35 }
 0x279   :  { %762 = vmatpush3.msra.mxu1 %v264_v35 }
 0x27a   :  { %763 = vmatprep.subr.mxu1 %v263_v36 }
 0x27b   :  { %764 = vmatpush3.msra.mxu1 %v263_v36 }
 0x27c   :  { %765 = vmatprep.subr.mxu1 %v262_v37 }
 0x27d   :  { %766 = vmatpush3.msra.mxu1 %v262_v37 }
 0x27e   :  { %767 = vmatprep.subr.mxu1 %v261_v38 }
 0x27f   :  { %768 = vmatpush3.msra.mxu1 %v261_v38 }
 0x280   :  { %769 = vmatprep.subr.mxu1 %v260_v39 }
 0x281   :  { %770 = vmatpush3.msra.mxu1 %v260_v39 }
 0x282   :  { %771 = vmatprep.subr.mxu1 %v259_v40 }
 0x283   :  { %772 = vmatpush3.msra.mxu1 %v259_v40 }
 0x284   :  { %773 = vmatprep.subr.mxu1 %v258_v41 }
 0x285   :  { %774 = vmatpush3.msra.mxu1 %v258_v41 }
 0x286   :  { %775 = vmatprep.subr.mxu1 %v257_v42 }
 0x287   :  { %776 = vmatpush3.msra.mxu1 %v257_v42 }
 0x288   :  { %777 = vmatprep.subr.mxu1 %v256_v43 }
 0x289   :  { %778 = vmatpush3.msra.mxu1 %v256_v43 }
 0x32a   :  { %v349_v44 = vpop.f32.mrf.mxu0  ;;  %v308_v45 = vpop.f32.mrf.mxu1 }
 0x32c   :  { %v745_v46 = vpop.f32.mrf.mxu0  ;;  %v739_v47 = vpop.f32.mrf.mxu1 }
 0x32e   :  { %v352_v48 = vpop.f32.mrf.mxu0  ;;  %v311_v49 = vpop.f32.mrf.mxu1 }
 0x32f   :  { %v811_v50 = vpack.i.bf16 %v352_v48, %v349_v44 }
 0x330   :  { %v746_v51 = vpop.f32.mrf.mxu0  ;;  %v740_v52 = vpop.f32.mrf.mxu1 }
 0x331   :  { %812 = vrot.lane.b32.xlu1 %v811_v50, %s846_s30 }
 0x3a3   :  { %v813_v53 = vpop.permute.xlu1 %812 }
 0x3a4   :  { %v815_v54 = vunpack.i.h.bf16 %v813_v53  ;;  %v814_v55 = vunpack.i.l.bf16 %v813_v53 }
 0x3a6   :  { %v365_v56 = vsel %vm364_vm3, %v308_v45, %v814_v55  ;;  %v366_v57 = vsel %vm364_vm3, %v311_v49, %v815_v54 }
 0x3a7   :  { %779 = vmatprep.mubr.f32.mxu1 %v365_v56 }
 0x3a8   :  { %780 = vmatmul.mubr.f32.vlgmr.msra.gmra.mxu1 %v366_v57 }
 0x468   :  { %v781_v62 = vpop.f32.mrf.mxu1 }
 0x469   :  { %v445_v63 = vadd.f32 %v781_v62, %v671_v61 }
 0x46a   :  { %v439_v0 = vpop.f32.mrf.mxu1 }
 0x46b   :  { %v440_v2 = vadd.f32 %v671_v61, %v439_v0  ;;  %v449_v3 = vsel %vm364_vm3, %v445_v63, -inf }
 0x46d   :  { %v448_v4 = vsel %vm364_vm3, %v440_v2, -inf }
 0x46e   :  { %v450_v5 = vmax.f32 %v448_v4, %v449_v3 }
 0x470   :  { %v451_v7 = vrot.slane %v450_v5, 4 }
 0x472   :  { %v452_v8 = vmax.f32 %v450_v5, %v451_v7 }
 0x474   :  { %v453_v9 = vrot.slane %v452_v8, 2 }
 0x476   :  { %v454_v10 = vmax.f32 %v452_v8, %v453_v9 }
 0x478   :  { %v455_v11 = vrot.slane %v454_v10, 1 }
 0x47a   :  { %v456_v12 = vmax.f32 %v454_v10, %v455_v11 }
 0x47c   :  { %458 = vrot.lane.b32.xlu1 %v456_v12, %s847_s5 }
 0x4ee   :  { %v459_v13 = vpop.permute.xlu1 %458 }
 0x4ef   :  { %v462_v15 = vsel %vm461_vm4, %v456_v12, %v459_v13 }
 0x4f0   :  { %791 = vmatmul.mubr.msk.f32.vlgmr.msra.gmra.mxu0 %vm474_vm5, %v462_v15 }
 0x4f1   :  { %794 = vmatpush3.msra.mxu0 %v554_v14  ;;  %801 = vmatprep.mubr.msk.f32.mxu0 %vm844_vm0, %v843_v1 }
 0x4f2   :  { %795 = vmatprep.subr.mxu0 %v843_v1 }
 0x4f3   :  { %796 = vmatpush3.msra.mxu0 %v553_v16 }
 0x4f4   :  { %797 = vmatprep.subr.mxu0 %v843_v1 }
 0x4f5   :  { %798 = vmatpush3.msra.mxu0 %v552_v17 }
 0x4f6   :  { %799 = vmatprep.subr.mxu0 %v843_v1  ;;  %v674_v1 = vld [vmem:[%s1054_s9] ss:$0 sm:$0xff]  ;;  %s821_s9 = scalar_lea.vmem %s656_s8, 32 }
 0x4f7   :  { %800 = vmatpush3.msra.mxu0 %v551_v18  ;;  %p822_p0 = scmp.ne.s32.totalorder %s656_s8, %s821_s9  ;;  %p827_p2 = scmp.lt.s32.totalorder %s821_s9, %s821_s9 }
 0x4f9   :  { %p828_p3 = por %p827_p2, %p826_p1 }
 0x4fb   :  { %p829_p4 = pnand %p828_p3, %p822_p0 }
 0x5b0   :  { %v544_v20 = vpop.f32.mrf.mxu0 }
 0x5b1   :  { %v545_v21 = vadd.f32 %v672_v19, %v544_v20 }
 0x5b2   :  { %v792_v22 = vpop.f32.mrf.mxu0 }
 0x5b3   :  { %vm548_vm6 = vcmp.gt.f32.partialorder %v545_v21, 0.0  ;;  %v549_v23 = vmul.f32 0.01, %v545_v21 }
 0x5b5   :  { %v550_v24 = vsel %vm548_vm6, %v545_v21, %v549_v23 }
 0x5b6   :  { %802 = vmatmul.mubr.msk.f32.vlgmr.msra.gmra.mxu0 %vm474_vm5, %v550_v24 }
 0x676   :  { %v631_v25 = vpop.f32.mrf.mxu0 }
 0x677   :  { %v632_v26 = vadd.f32 %v674_v1, %v631_v25 }
 0x678   :  { %v803_v27 = vpop.f32.mrf.mxu0 }
 0x679   :  { %v636_v28 = vsel %vm635_vm7, %v632_v26, -inf }
 0x67a   :  { %637 = vmax.xlane.f32.xlu1 %v636_v28 }
 0x703   :  { %v638_v29 = vpop.xlane.xlu1 %637 }
 0x704   :  { %v639_v30 = vsub.f32 %v632_v26, %v638_v29 }
 0x706   :  { %v640_v31 = vmul.f32 1.442695, %v639_v30 }
 0x708   :  { %817 = vpow2.f32 %v640_v31 }
 0x715   :  { %v818_v32 = vpop.eup %817 }
 0x716   :  { %v642_v33 = vsel %vm635_vm7, %v818_v32, 0.0 }
 0x717   :  { %643 = vadd.xlane.f32.xlu0 %v642_v33 }
 0x7a0   :  { %v644_v34 = vpop.xlane.xlu0 %643 }
 0x7a1   :  { %819 = vlog2.f32 %v644_v34 }
 0x7ae   :  { %v820_v35 = vpop.eup %819 }
 0x7af   :  { %v646_v36 = vmul.f32 0.6931472, %v820_v35 }
 0x7b1   :  { %v647_v37 = vsub.f32 %v639_v30, %v646_v36 }
 0x7b3   :  { %648 = vst.msk [vmem:[#allocation2] sm:$0x3] %vm635_vm7, %v647_v37 }
 0x7b4   :  { %832 = shalt.err (!%p829_p4)
}
 0x7b5   :  { %658 = dma.vmem_to_hbm [thread:$0]  %s656_s8, 32, %s1055_s10, [#allocation3]  }
 0x7b6   :  { %841 = dma.done.wait [#allocation3], 32  }
 0x7b7   :  { %842 = vsyncadd [#allocation3], 4294967264 }
 0x7b8   :  { %662 = vsyncpa [#allocation3], 1 }

</bundles_post_ra>
